<compile_context>
chip_gen: v5e
topology: v5e:2x2
jax: 0.10.0
libtpu: 0.0.40
codegen_flags: <defaults>
</compile_context>

<pallas_src>
import jax
import jax.numpy as jnp
from jax.experimental import pallas as pl
from jax.experimental.pallas import tpu as pltpu

K = 7          # conv kernel size
PAD = 3        # conv padding
ROW_OFF = 8    # top pad inside conv scratch (sublane-tile aligned, >= PAD)
LANE_OFF = 128 # left pad inside conv scratch (lane-tile aligned, >= PAD)


def _roundup(x, m):
    return ((x + m - 1) // m) * m


def _largest_divisor_leq(n, cap, multiple_of=1):
    cap = max(1, min(n, cap))
    for d in range(cap, 0, -1):
        if n % d == 0 and d % multiple_of == 0:
            return d
    return None


def _vmem_capacity_bytes():
    try:
        cap = int(getattr(pltpu.get_tpu_info(), "vmem_capacity_bytes", 0))
        if cap > 0:
            return cap
    except Exception:
        pass
    return 64 * 1024 * 1024  # conservative default (v7x per-TC physical)


# --------------------------------------------------------------------------
# Kernel A: channel mean/max pooling over a lane-dense spatial view.
# --------------------------------------------------------------------------
def _make_pool_kernel(C, ct_inner):
    inv_c = 1.0 / float(C)

    def kernel(x_ref, pooled_ref):
        # x_ref:      (1, ct_outer, rt, cols) input block, original dtype
        # pooled_ref: (1, 2, rt, cols) f32; [0]=running sum->avg, [1]=running max
        c = pl.program_id(2)
        nc = pl.num_programs(2)
        ct_outer = x_ref.shape[1]
        rt, cols = x_ref.shape[2], x_ref.shape[3]
        n_sub = ct_outer // ct_inner

        @pl.when(c == 0)
        def _init():
            pooled_ref[0, 0] = jnp.zeros((rt, cols), jnp.float32)
            pooled_ref[0, 1] = jnp.full((rt, cols), -jnp.inf, jnp.float32)

        # Chunked channel reduction with small f32 vreg carries; per-chunk cast.
        def body(i, carry):
            s, m = carry
            start = pl.multiple_of(i * ct_inner, ct_inner)
            xc = x_ref[0, pl.ds(start, ct_inner)].astype(jnp.float32)
            s = s + jnp.sum(xc, axis=0)
            m = jnp.maximum(m, jnp.max(xc, axis=0))
            return s, m

        s0 = jnp.zeros((rt, cols), jnp.float32)
        m0 = jnp.full((rt, cols), -jnp.inf, jnp.float32)
        ps, pm = jax.lax.fori_loop(0, n_sub, body, (s0, m0),
                                   unroll=min(n_sub, 8))

        pooled_ref[0, 0] = pooled_ref[0, 0] + ps
        pooled_ref[0, 1] = jnp.maximum(pooled_ref[0, 1], pm)

        @pl.when(c == nc - 1)
        def _finalize():
            pooled_ref[0, 0] = pooled_ref[0, 0] * inv_c

    return kernel


# --------------------------------------------------------------------------
# Kernel B: 7x7 conv (2 -> 1 channel, pad 3) + sigmoid on the pooled maps.
# --------------------------------------------------------------------------
def _make_conv_kernel(H, W):
    def kernel(w_avg_ref, w_max_ref, b_ref, p_ref, o_ref,
               avg_pad_ref, max_pad_ref):
        # p_ref: (1, 2, H, W) f32 pooled maps; o_ref: (1, 1, H, W) out dtype
        avg_pad_ref[...] = jnp.zeros_like(avg_pad_ref)
        max_pad_ref[...] = jnp.zeros_like(max_pad_ref)
        avg_pad_ref[ROW_OFF:ROW_OFF + H, LANE_OFF:LANE_OFF + W] = p_ref[0, 0]
        max_pad_ref[ROW_OFF:ROW_OFF + H, LANE_OFF:LANE_OFF + W] = p_ref[0, 1]

        # Hoist all 98 SMEM weight reads (+ bias) before the tap loop.
        wa = [w_avg_ref[i] for i in range(K * K)]
        wm = [w_max_ref[i] for i in range(K * K)]
        bias = b_ref[0]

        zero = jnp.zeros((H, W), jnp.float32)
        accs = [zero, zero, zero, zero]
        for kh in range(K):
            r0 = ROW_OFF - PAD + kh
            for kw in range(K):
                c0 = LANE_OFF - PAD + kw
                t = kh * K + kw
                a_sl = avg_pad_ref[r0:r0 + H, c0:c0 + W]
                m_sl = max_pad_ref[r0:r0 + H, c0:c0 + W]
                accs[t % 2] = accs[t % 2] + wa[t] * a_sl
                accs[2 + (t % 2)] = accs[2 + (t % 2)] + wm[t] * m_sl
        acc = (accs[0] + accs[1]) + (accs[2] + accs[3]) + bias
        o_ref[0, 0] = jax.nn.sigmoid(acc).astype(o_ref.dtype)

    return kernel


def spatial_attention(x, weight, bias):
    """x: (N, C, H, W); weight: (1, 2, 7, 7); bias: (1,). Returns (N, 1, H, W)."""
    N, C, H, W = x.shape
    dtype = x.dtype
    itemsize = jnp.dtype(dtype).itemsize
    subl = max(8, 32 // itemsize)          # sublane tile: 8 f32 / 16 bf16 / 32 int8
    vmem_cap = _vmem_capacity_bytes()

    # ---- lane-dense spatial view ------------------------------------------
    HW = H * W
    if HW % 128 == 0:
        R, COLS = HW // 128, 128           # full-lane rows, nominal == tiled bytes
    else:
        R, COLS = H, W                     # correct fallback (lane-padded in VMEM)
        # TODO(synk): lane-pack odd H*W shapes (e.g. 56x56) instead of W-wide rows.
    x_r = x.reshape(N, C, R, COLS)         # free: contiguous NCHW reshape

    lane_cols = _roundup(COLS, 128)

    # ---- spatial row tile: bounds vreg pressure, gives v7x a 2nd parallel axis
    rt_cap = max(subl, (8 * 1024) // (lane_cols * 4))   # f32 carry <= ~8 KiB (2 vregs)
    rt = (_largest_divisor_leq(R, rt_cap, multiple_of=subl)
          or _largest_divisor_leq(R, rt_cap, multiple_of=8)
          or R)

    # ---- channel tile: real (8,128)-tiled footprint vs. capacity-aware budget
    chan_bytes = _roundup(rt, subl) * lane_cols * itemsize
    block_budget = max(chan_bytes, min(8 << 20, vmem_cap // 10))
    ct_outer = _largest_divisor_leq(C, max(1, block_budget // chan_bytes)) or 1
    ct_inner = _largest_divisor_leq(ct_outer, 8) or 1

    in_block_bytes = ct_outer * chan_bytes
    pooled_blk_bytes = 2 * _roundup(rt, 8) * lane_cols * 4
    need_a = 2 * in_block_bytes + 2 * pooled_blk_bytes + (1 << 20)
    vmem_limit_a = int(min(max(need_a, 32 << 20), int(vmem_cap * 0.9)))

    pooled = pl.pallas_call(
        _make_pool_kernel(C, ct_inner),
        out_shape=jax.ShapeDtypeStruct((N, 2, R, COLS), jnp.float32),
        grid_spec=pltpu.PrefetchScalarGridSpec(
            num_scalar_prefetch=0,
            grid=(N, R // rt, C // ct_outer),
            in_specs=[pl.BlockSpec((1, ct_outer, rt, COLS),
                                   lambda n, r, c: (n, c, r, 0))],
            out_specs=pl.BlockSpec((1, 2, rt, COLS),
                                   lambda n, r, c: (n, 0, r, 0)),
        ),
        compiler_params=pltpu.CompilerParams(
            dimension_semantics=("parallel", "parallel", "arbitrary"),
            vmem_limit_bytes=vmem_limit_a),
    )(x_r)

    pooled = pooled.reshape(N, 2, H, W)    # free: contiguous reshape

    # ---- tiny conv(7x7, 2->1) + sigmoid epilogue over the pooled maps ------
    w_avg = weight[0, 0].reshape(-1).astype(jnp.float32)   # (49,)
    w_max = weight[0, 1].reshape(-1).astype(jnp.float32)   # (49,)
    b = bias.astype(jnp.float32)                            # (1,)

    hp = ROW_OFF + H + PAD
    wp = LANE_OFF + W + PAD
    need_b = (2 * 2 * H * W * 4 + 2 * H * W * itemsize
              + 2 * _roundup(hp, 8) * _roundup(wp, 128) * 4 + (1 << 20))
    vmem_limit_b = int(min(max(need_b, 16 << 20), int(vmem_cap * 0.9)))

    out = pl.pallas_call(
        _make_conv_kernel(H, W),
        out_shape=jax.ShapeDtypeStruct((N, 1, H, W), dtype),
        grid_spec=pltpu.PrefetchScalarGridSpec(
            num_scalar_prefetch=0,
            grid=(N,),
            in_specs=[
                pl.BlockSpec(memory_space=pltpu.MemorySpace.SMEM),   # avg taps
                pl.BlockSpec(memory_space=pltpu.MemorySpace.SMEM),   # max taps
                pl.BlockSpec(memory_space=pltpu.MemorySpace.SMEM),   # bias
                pl.BlockSpec((1, 2, H, W), lambda n: (n, 0, 0, 0)),
            ],
            out_specs=pl.BlockSpec((1, 1, H, W), lambda n: (n, 0, 0, 0)),
            scratch_shapes=[
                pltpu.VMEM((hp, wp), jnp.float32),   # zero-padded avg map
                pltpu.VMEM((hp, wp), jnp.float32),   # zero-padded max map
            ],
        ),
        compiler_params=pltpu.CompilerParams(
            dimension_semantics=("parallel",),
            vmem_limit_bytes=vmem_limit_b),
    )(w_avg, w_max, b, pooled)
    return out


def _reference(x, weight, bias):
    avg = jnp.mean(x, axis=1, keepdims=True)
    mx = jnp.max(x, axis=1, keepdims=True)
    cat = jnp.concatenate([avg, mx], axis=1)          # (N,2,H,W)
    y = jax.lax.conv_general_dilated(
        cat, weight, window_strides=(1, 1), padding=((PAD, PAD), (PAD, PAD)),
        dimension_numbers=("NCHW", "OIHW", "NCHW"))
    y = y + bias.reshape(1, 1, 1, 1)
    return jax.nn.sigmoid(y)


if __name__ == "__main__":
    key = jax.random.PRNGKey(0)
    kx, kw, kb = jax.random.split(key, 3)

    N, C, H, W = 2, 4, 16, 16
    x = jax.random.normal(kx, (N, C, H, W), dtype=jnp.float32)

    # Deterministic parameter init (Conv2d(2, 1, 7, padding=3) shapes).
    fan_in = 2 * K * K
    bound = 1.0 / (fan_in ** 0.5)
    weight = jax.random.uniform(kw, (1, 2, K, K), jnp.float32, -bound, bound)
    bias = jax.random.uniform(kb, (1,), jnp.float32, -bound, bound)

    out = spatial_attention(x, weight, bias)
    out = jax.block_until_ready(out)

    ref = _reference(x, weight, bias)
    assert out.shape == (N, 1, H, W)
    err = float(jnp.max(jnp.abs(out - ref)))
    assert err < 1e-5, f"mismatch vs JAX reference: {err}"

    print("KERNEL_OK")
</pallas_src>

<mosaic_0001>
module attributes {stable_mosaic.version = 11 : i64} {
  func.func @kernel(%arg0: i32, %arg1: i32, %arg2: i32, %arg3: memref<1x4x2x128xf32, #tpu.memory_space<vmem>>, %arg4: memref<1x2x2x128xf32, #tpu.memory_space<vmem>>) attributes {dimension_semantics = [#tpu.dimension_semantics<parallel>, #tpu.dimension_semantics<parallel>, #tpu.dimension_semantics<arbitrary>], iteration_bounds = array<i64: 2, 1, 1>, scalar_prefetch = 0 : i64, scratch_operands = 0 : i64, tpu.core_type = #tpu.core_type<tc>, window_params = [{transform_indices = @transform_0, window_bounds = array<i64: 1, 4, 2, 128>}, {transform_indices = @transform_1, window_bounds = array<i64: 1, 2, 2, 128>}]} {
    %c0_i32 = arith.constant 0 : i32
    %0 = arith.cmpi eq, %arg2, %c0_i32 : i32
    %1 = arith.extui %0 : i1 to i32
    %c0_i32_0 = arith.constant 0 : i32
    %2 = arith.cmpi ne, %1, %c0_i32_0 : i32
    scf.if %2 {
      %cst_24 = arith.constant 0.000000e+00 : f32
      %29 = vector.broadcast %cst_24 : f32 to vector<2x128xf32>
      %c0_25 = arith.constant 0 : index
      %c0_26 = arith.constant 0 : index
      %c0_27 = arith.constant 0 : index
      %c0_28 = arith.constant 0 : index
      %30 = vector.load %arg4[%c0_25, %c0_26, %c0_27, %c0_28] : memref<1x2x2x128xf32, #tpu.memory_space<vmem>>, vector<1x1x2x128xf32>
      %31 = vector.shape_cast %30 : vector<1x1x2x128xf32> to vector<2x128xf32>
      %32 = vector.shape_cast %29 : vector<2x128xf32> to vector<1x1x2x128xf32>
      tpu.vector_store %arg4[%c0_25, %c0_26, %c0_27, %c0_28], %32 {strides = array<i32>} : memref<1x2x2x128xf32, #tpu.memory_space<vmem>>, vector<1x1x2x128xf32>,
      %cst_29 = arith.constant 0xFF800000 : f32
      %33 = vector.broadcast %cst_29 : f32 to vector<2x128xf32>
      %c0_30 = arith.constant 0 : index
      %c1_31 = arith.constant 1 : index
      %c0_32 = arith.constant 0 : index
      %c0_33 = arith.constant 0 : index
      %34 = vector.load %arg4[%c0_30, %c1_31, %c0_32, %c0_33] : memref<1x2x2x128xf32, #tpu.memory_space<vmem>>, vector<1x1x2x128xf32>
      %35 = vector.shape_cast %34 : vector<1x1x2x128xf32> to vector<2x128xf32>
      %36 = vector.shape_cast %33 : vector<2x128xf32> to vector<1x1x2x128xf32>
      tpu.vector_store %arg4[%c0_30, %c1_31, %c0_32, %c0_33], %36 {strides = array<i32>} : memref<1x2x2x128xf32, #tpu.memory_space<vmem>>, vector<1x1x2x128xf32>,
    } else {
    }
    %cst = arith.constant 0.000000e+00 : f32
    %3 = vector.broadcast %cst : f32 to vector<2x128xf32>
    %cst_1 = arith.constant 0xFF800000 : f32
    %4 = vector.broadcast %cst_1 : f32 to vector<2x128xf32>
    %c0_i32_2 = arith.constant 0 : i32
    %c4_i32 = arith.constant 4 : i32
    %5 = arith.muli %c0_i32_2, %c4_i32 : i32
    %6 = tpu.assume_multiple %5, 4 : i32
    %c0 = arith.constant 0 : index
    %7 = arith.index_cast %6 : i32 to index
    %c0_3 = arith.constant 0 : index
    %c0_4 = arith.constant 0 : index
    %8 = vector.load %arg3[%c0, %7, %c0_3, %c0_4] : memref<1x4x2x128xf32, #tpu.memory_space<vmem>>, vector<1x4x2x128xf32>
    %9 = vector.shape_cast %8 : vector<1x4x2x128xf32> to vector<4x2x128xf32>
    %cst_5 = arith.constant dense<0.000000e+00> : vector<2x128xf32>
    %10 = vector.multi_reduction <add>, %9, %cst_5 [0] : vector<4x2x128xf32> to vector<2x128xf32>
    %11 = arith.addf %3, %10 : vector<2x128xf32>
    %cst_6 = arith.constant dense<0xFF800000> : vector<2x128xf32>
    %12 = vector.multi_reduction <maximumf>, %9, %cst_6 [0] : vector<4x2x128xf32> to vector<2x128xf32>
    %13 = arith.maximumf %4, %12 : vector<2x128xf32>
    %c1_i32 = arith.constant 1 : i32
    %c0_7 = arith.constant 0 : index
    %c0_8 = arith.constant 0 : index
    %c0_9 = arith.constant 0 : index
    %c0_10 = arith.constant 0 : index
    %14 = vector.load %arg4[%c0_7, %c0_8, %c0_9, %c0_10] : memref<1x2x2x128xf32, #tpu.memory_space<vmem>>, vector<1x1x2x128xf32>
    %15 = vector.shape_cast %14 : vector<1x1x2x128xf32> to vector<2x128xf32>
    %16 = arith.addf %15, %11 : vector<2x128xf32>
    %c0_11 = arith.constant 0 : index
    %c0_12 = arith.constant 0 : index
    %c0_13 = arith.constant 0 : index
    %c0_14 = arith.constant 0 : index
    %17 = vector.load %arg4[%c0_11, %c0_12, %c0_13, %c0_14] : memref<1x2x2x128xf32, #tpu.memory_space<vmem>>, vector<1x1x2x128xf32>
    %18 = vector.shape_cast %17 : vector<1x1x2x128xf32> to vector<2x128xf32>
    %19 = vector.shape_cast %16 : vector<2x128xf32> to vector<1x1x2x128xf32>
    tpu.vector_store %arg4[%c0_11, %c0_12, %c0_13, %c0_14], %19 {strides = array<i32>} : memref<1x2x2x128xf32, #tpu.memory_space<vmem>>, vector<1x1x2x128xf32>,
    %c0_15 = arith.constant 0 : index
    %c1 = arith.constant 1 : index
    %c0_16 = arith.constant 0 : index
    %c0_17 = arith.constant 0 : index
    %20 = vector.load %arg4[%c0_15, %c1, %c0_16, %c0_17] : memref<1x2x2x128xf32, #tpu.memory_space<vmem>>, vector<1x1x2x128xf32>
    %21 = vector.shape_cast %20 : vector<1x1x2x128xf32> to vector<2x128xf32>
    %22 = arith.maximumf %21, %13 : vector<2x128xf32>
    %c0_18 = arith.constant 0 : index
    %c1_19 = arith.constant 1 : index
    %c0_20 = arith.constant 0 : index
    %c0_21 = arith.constant 0 : index
    %23 = vector.load %arg4[%c0_18, %c1_19, %c0_20, %c0_21] : memref<1x2x2x128xf32, #tpu.memory_space<vmem>>, vector<1x1x2x128xf32>
    %24 = vector.shape_cast %23 : vector<1x1x2x128xf32> to vector<2x128xf32>
    %25 = vector.shape_cast %22 : vector<2x128xf32> to vector<1x1x2x128xf32>
    tpu.vector_store %arg4[%c0_18, %c1_19, %c0_20, %c0_21], %25 {strides = array<i32>} : memref<1x2x2x128xf32, #tpu.memory_space<vmem>>, vector<1x1x2x128xf32>,
    %c0_i32_22 = arith.constant 0 : i32
    %26 = arith.cmpi eq, %arg2, %c0_i32_22 : i32
    %27 = arith.extui %26 : i1 to i32
    %c0_i32_23 = arith.constant 0 : i32
    %28 = arith.cmpi ne, %27, %c0_i32_23 : i32
    scf.if %28 {
      %c0_24 = arith.constant 0 : index
      %c0_25 = arith.constant 0 : index
      %c0_26 = arith.constant 0 : index
      %c0_27 = arith.constant 0 : index
      %29 = vector.load %arg4[%c0_24, %c0_25, %c0_26, %c0_27] : memref<1x2x2x128xf32, #tpu.memory_space<vmem>>, vector<1x1x2x128xf32>
      %30 = vector.shape_cast %29 : vector<1x1x2x128xf32> to vector<2x128xf32>
      %cst_28 = arith.constant 2.500000e-01 : f32
      %31 = vector.broadcast %cst_28 : f32 to vector<2x128xf32>
      %32 = arith.mulf %30, %31 : vector<2x128xf32>
      %c0_29 = arith.constant 0 : index
      %c0_30 = arith.constant 0 : index
      %c0_31 = arith.constant 0 : index
      %c0_32 = arith.constant 0 : index
      %33 = vector.load %arg4[%c0_29, %c0_30, %c0_31, %c0_32] : memref<1x2x2x128xf32, #tpu.memory_space<vmem>>, vector<1x1x2x128xf32>
      %34 = vector.shape_cast %33 : vector<1x1x2x128xf32> to vector<2x128xf32>
      %35 = vector.shape_cast %32 : vector<2x128xf32> to vector<1x1x2x128xf32>
      tpu.vector_store %arg4[%c0_29, %c0_30, %c0_31, %c0_32], %35 {strides = array<i32>} : memref<1x2x2x128xf32, #tpu.memory_space<vmem>>, vector<1x1x2x128xf32>,
    } else {
    }
    return
  }
  func.func @transform_0(%arg0: i32, %arg1: i32, %arg2: i32) -> (i32, i32, i32, i32) {
    %c0_i32 = arith.constant 0 : i32
    %c0_i32_0 = arith.constant 0 : i32
    return %arg0, %arg2, %arg1, %c0_i32 : i32, i32, i32, i32
  }
  func.func @transform_1(%arg0: i32, %arg1: i32, %arg2: i32) -> (i32, i32, i32, i32) {
    %c0_i32 = arith.constant 0 : i32
    %c0_i32_0 = arith.constant 0 : i32
    %c0_i32_1 = arith.constant 0 : i32
    return %arg0, %c0_i32, %arg1, %c0_i32_0 : i32, i32, i32, i32
  }
}

</mosaic_0001>

<bundles_post_ra>
// kernel: tpu_custom_call.1
= control target key start
LH: loop header
LB: loop body
LE: loop exit
PB: predicated region body
PF: predicated region fallthrough
CT: control target
= control target key end

     0   :  { %6 = vsyncpa [#allocation3], 0  ;;  %s665_s0 = inlined_call_operand.hbm [shape: f32[2,4,2,128], index: 0, kind: input, shape index: {}]   ;;  %s666_s1 = inlined_call_operand.hbm [shape: f32[2,2,2,128], index: 1, kind: output, shape index: {}]  }
   0x1   :  { %8 = vsyncpa [#allocation3 + $0x1], 0 }
   0x2   :  { %9 = vsyncpa [#allocation4], 0 }
   0x3   :  { %11 = vsyncpa [#allocation4 + $0x1], 0  ;;  %s533_s6 = smov 0   ;;  %s535_s7 = smov 0  }
   0x4   :  { %s537_s8 = smov 0   ;;  %s539_s9 = smov 0  }
   0x5   :  { %s541_s10 = smov 0   ;;  %s543_s11 = smov 0  }
   0x6 LB: > { %s315_s12 = sadd.s32 4294967295, %s515_s11   ;;  %s316_s13 = sadd.s32 4294967294, %s515_s11   ;;  %s515_s11 = sphi %s543_s11, %s17_s11   ;;  %s511_s10 = sphi %s541_s10, %s675_s10   ;;  %s507_s9 = sphi %s539_s9, %s674_s9   ;;  %s503_s8 = sphi %s537_s8, %s673_s8   ;;  %s499_s7 = sphi %s535_s7, %s672_s7   ;;  %s495_s6 = sphi %s533_s6, %s671_s6  }
   0x7   : > { %s36_s14 = sadd.s32 1, %s511_s10  ;;  %s47_s15 = sadd.s32 1, %s503_s8 }
   0x8   : > { %p38_p0 = scmp.ge.s32.totalorder %s36_s14, 2  ;;  %p54_p1 = scmp.ne.s32.totalorder %s503_s8, %s499_s7 }
   0x9   : > { %p55_p2 = scmp.eq.s32.totalorder %s515_s11, 0  ;;  %p60_p3 = scmp.ne.s32.totalorder %s499_s7, %s495_s6 }
   0xa   : > { %s677_s14 = smov (%p38_p0, %s36_s14), 0  ;;  %p61_p5 = scmp.eq.s32.totalorder %s315_s12, 0 }
   0xb   : > { %p574_p4 = por %p55_p2, %p54_p1  ;;  %s40_s17 = ssub.s32 %s511_s10, %s677_s14 }
   0xc   : > { %p86_p6 = scmp.eq.s32.totalorder %s315_s12, 1  ;;  %p45_p7 = scmp.eq.s32.totalorder %s40_s17, 0 }
   0xd   : > { %p580_p8 = por %p61_p5, %p60_p3  ;;  %p92_p10 = scmp.eq.s32.totalorder %s316_s13, 1 }
   0xe   : > { %p584_p9 = por %p86_p6, %p54_p1  ;;  %p318_p12 = scmp.ge.s32.totalorder %s515_s11, 2 }
   0xf   : > { %s589_s20 = scalar_select %p45_p7, %s503_s8, %s47_s15  }
  0x10   : > { %p591_p11 = por %p92_p10, %p60_p3  ;;  %p347_p13 = scmp.lt.s32.totalorder %s515_s11, 2 }
  0x11   : > { %s112_s22 = sand.u32 1, %s503_s8   ;;  %s333_s24 = sshll.u32 %s511_s10, 3 }
  0x12   : > { %s319_s23 = sshll.u32 %s112_s22, 3  ;;  %s124_s27 = scalar_lea.hbm %s665_s0, %s333_s24 }
  0x13   : > { %s116_s28 = scalar_lea.vmem [#allocation2], %s319_s23  ;;  %s125_s30 = sshll.u32 %s124_s27, 4  ;;  %s126_s30 = int_to_ptr.hbm [resolvable:$true] %s125_s30 }
  0x14   : > { %s127_s29 = sshll.u32 %s116_s28, 4  ;;  %p340_p0 = pnand %p347_p13, %p574_p4  ;;  %s128_s29 = int_to_ptr.vmem [resolvable:$true] %s127_s29 }
  0x15   : > { %p322_p1 = scmp.ge.s32.totalorder %s515_s11, 1  ;;  %s113_s2 = scalar_lea.sflag [#allocation3], %s112_s22 }
  0x16   : > { %s517_s3 = smov 32   ;;  %s518_s4 = smov 2  }
  0x17   : > { %342 = dma.hbm_to_vmem [thread:$0]  (!%p340_p0), %s126_s30, 128, %s128_s29, %s113_s2, %s517_s3, %s517_s3, %s518_s4  }
  0x18   : > { %p135_p2 = scmp.lt.s32.totalorder %s515_s11, 3 }
  0x1a   : > { %p136_p3 = pnand %p322_p1, %p135_p2 }
  0x1b   : > { %s607_s5 = sand.u32 (!%p136_p3), 1, %s499_s7  }
  0x1c   : > { %139 = sbr.rel (%p136_p3) target bundleno = 60 (0x3c), region = 24  ;;  %s323_s12 = sshll.u32 (!%p136_p3), %s607_s5, 3 }
  0x1d   : > { %s142_s13 = scalar_lea.sflag (!%p136_p3), [#allocation3], %s607_s5  ;;  %s145_s15 = scalar_lea.vmem (!%p136_p3), [#allocation2], %s323_s12 }
  0x21   : > { %486 = dma.done.wait (%p580_p8), %s142_s13, 128  }
  0x22   : > { %488 = vsyncadd (%p580_p8), %s142_s13, 4294967168  ;;  %s324_s16 = sshll.u32 %s607_s5, 2  ;;  %v519_v0 = vmov 0.0   ;;  %v520_v1 = vmov -inf   ;;  %vm179_vm0 = vcmask 1041408   ;;  %s334_s18 = sshll.u32 %s507_s9, 2 }
  0x23   : > { %s616_s17 = scalar_lea.vmem [#allocation5], %s324_s16  ;;  %v175_v2 = vld [vmem:[%s145_s15] sm:$0x3]  ;;  %v176_v3 = vld [vmem:[%s145_s15 + $0x2] sm:$0x3]  ;;  %s221_s24 = scalar_lea.hbm %s666_s1, %s334_s18 }
  0x24   : > { %170 = vst [vmem:[%s616_s17] sm:$0x3] %v519_v0  ;;  %v177_v4 = vld [vmem:[%s145_s15 + $0x4] sm:$0x3]  ;;  %v178_v5 = vld [vmem:[%s145_s15 + $0x6] sm:$0x3]  ;;  %v180_v6 = vsel %vm179_vm0, %v175_v2, 0.0 }
  0x25   : > { %325 = vst [vmem:[%s616_s17 + $0x2] sm:$0x3] %v520_v1  ;;  %v181_v7 = vsel %vm179_vm0, %v176_v3, 0.0  ;;  %v183_v8 = vsel %vm179_vm0, %v177_v4, 0.0  ;;  %v188_v9 = vsel %vm179_vm0, %v175_v2, -inf  ;;  %v189_v11 = vsel %vm179_vm0, %v176_v3, -inf }
  0x26   : > { %v182_v10 = vadd.f32 %v181_v7, %v180_v6  ;;  %v190_v12 = vsel %vm179_vm0, %v177_v4, -inf  ;;  %v185_v13 = vsel %vm179_vm0, %v178_v5, 0.0  ;;  %v191_v14 = vsel %vm179_vm0, %v178_v5, -inf  ;;  %s222_s25 = sshll.u32 %s616_s17, 4  ;;  %s224_s26 = sshll.u32 %s221_s24, 4  ;;  %s223_s25 = int_to_ptr.vmem [resolvable:$true] %s222_s25  ;;  %s225_s26 = int_to_ptr.hbm [resolvable:$true] %s224_s26 }
  0x27   : > { %v192_v15 = vmax.f32 %v188_v9, %v189_v11  ;;  %v193_v17 = vmax.f32 %v190_v12, %v191_v14  ;;  %s209_s27 = scalar_lea.sflag [#allocation4], %s607_s5  ;;  %s447_s28 = sshra.s32 %s225_s26, 4  ;;  %s448_s28 = int_to_ptr.hbm [resolvable:$true] %s447_s28 }
  0x28   : > { %v184_v16 = vadd.f32 %v183_v8, %v182_v10  ;;  %s449_s29 = scalar_lea.hbm %s448_s28, 4  ;;  %s453_s2 = scalar_lea.hbm %s666_s1, 8 }
  0x29   : > { %v194_v21 = vmax.f32 %v192_v15, %v193_v17  ;;  %p450_p4 = scmp.ne.s32.totalorder %s448_s28, %s449_s29  ;;  %p454_p7 = scmp.lt.s32.totalorder %s448_s28, %s666_s1 }
  0x2a   : > { %v186_v20 = vadd.f32 %v185_v13, %v184_v16  ;;  %p455_p8 = scmp.lt.s32.totalorder %s453_s2, %s449_s29 }
  0x2b   : > { %v195_v18 = vld [vmem:[%s616_s17] sm:$0x3]  ;;  %p451_p5 = pnand %p450_p4, %p584_p9 }
  0x2c   : > { %v326_v19 = vld [vmem:[%s616_s17 + $0x2] sm:$0x3]  ;;  %v196_v22 = vadd.f32 %v195_v18, %v186_v20  ;;  %p456_p10 = por %p455_p8, %p454_p7 }
  0x2d   : > { %v200_v23 = vmax.f32 %v326_v19, %v194_v21  ;;  %p452_p6 = pneg %p451_p5 }
  0x2e   : > { %197 = vst [vmem:[%s616_s17] sm:$0x3] %v196_v22 }
  0x2f   : > { %327 = vst [vmem:[%s616_s17 + $0x2] sm:$0x3] %v200_v23  ;;  %p457_p13 = pnand %p456_p10, %p452_p6 }
  0x35   : > { %v205_v24 = vld [vmem:[%s616_s17] sm:$0x3] }
  0x36   : > { %v206_v25 = vmul.f32 0.25, %v205_v24 }
  0x38   : > { %207 = vst [vmem:[%s616_s17] sm:$0x3] %v206_v25 }
  0x39   : > { %460 = shalt.err (!%p457_p13)
}
  0x3a   : > { %s521_s5 = smov 32   ;;  %s522_s12 = smov 2  }
  0x3b   : > { %337 = dma.vmem_to_hbm [thread:$0]  (%p584_p9), %s223_s25, 64, %s225_s26, %s209_s27, %s521_s5, %s521_s5, %s522_s12  }
  0x3c PF: > { %s239_s13 = sand.u32 1, %s495_s6   ;;  %p344_p0 = pnand %p318_p12, %p591_p11 }
  0x3d   : > { %s240_s15 = scalar_lea.sflag [#allocation4], %s239_s13 }
  0x3e   : > { %p345_p1 = pneg %p344_p0 }
  0x40   : > { %490 = dma.done.wait (%p345_p1), %s240_s15, 64  }
  0x41   : > { %492 = vsyncadd (%p345_p1), %s240_s15, 4294967232  ;;  %s17_s11 = sadd.s32 1, %s515_s11   ;;  %s671_s6 = smov %s499_s7 }
  0x42   : > { %p14_p2 = scmp.ge.s32.totalorder %s17_s11, 4   ;;  %s672_s7 = smov %s503_s8 }
  0x43   : > { %s673_s8 = smov %s589_s20  ;;  %s674_s9 = smov %s511_s10 }
  0x44   : > { %s675_s10 = smov %s677_s14  ;;  %16 = sbr.rel (!%p14_p2) target bundleno = 6 (0x6), region = 80 }
  0x49   :  { %246 = vsyncpa [#allocation3], 1 }
  0x4a   :  { %248 = vsyncpa [#allocation3 + $0x1], 1 }
  0x4b   :  { %249 = vsyncpa [#allocation4], 1 }
  0x4c   :  { %251 = vsyncpa [#allocation4 + $0x1], 1 }

</bundles_post_ra>
